<compile_context>
chip_gen: v6e
topology: v6e:2x2x1
jax: 0.10.0
libtpu: 0.0.40
codegen_flags: <defaults>
</compile_context>

<pallas_src>
import numpy as np
import jax
import jax.numpy as jnp
from jax.experimental import pallas as pl
from jax.experimental.pallas import tpu as pltpu


# ----------------------------- tiling helpers --------------------------------

def _vmem_limit_bytes():
    """Generation-aware scoped-VMEM limit: half of physical capacity, capped
    at 64 MiB (v5e/v6e: 128 MiB physical, v7x: 64 MiB per TensorCore)."""
    try:
        cap = int(pltpu.get_tpu_info().vmem_capacity_bytes)
    except Exception:
        cap = 64 * 1024 * 1024          # conservative (v7x per-TC physical)
    return max(16 * 1024 * 1024, min(cap // 2, 64 * 1024 * 1024))


_VMEM_LIMIT_BYTES = _vmem_limit_bytes()
_VMEM_BUDGET_BYTES = _VMEM_LIMIT_BYTES // 2   # for the double-buffered blocks
_TB_CAP = 512   # rows: f32 tiles saturate HBM ~here; more steps = more overlap

_COMPILER_PARAMS = pltpu.CompilerParams(
    dimension_semantics=("parallel",),
    vmem_limit_bytes=_VMEM_LIMIT_BYTES,
)


def _choose_tb(batch, bytes_per_row):
    """Batch tile size.

    Capped at _TB_CAP rows (these kernels are HBM-bound; bigger tiles only
    reduce grid steps and hence pipelining/megacore overlap), fit to the VMEM
    budget (double-buffered), sublane-aligned, and — when possible — an exact
    divisor of the batch so no input pad / output slice copy is needed.
    Small batches get a single big tile rather than tiny per-core tiles
    (per-grid-step overhead dominates small tiles, especially on v7x)."""
    fit = max(8, int(_VMEM_BUDGET_BYTES // (2 * max(int(bytes_per_row), 1))))
    tb = min(_TB_CAP, fit, int(batch))
    if tb >= 8:
        tb = (tb // 8) * 8
    tb = max(tb, 1)
    if tb >= 16 and batch % tb != 0:
        # Prefer an exact divisor within 2x of the target tile size
        # (avoids jnp.pad of the whole input + out[:B] slice copies).
        lo = max(8, (tb // 2 // 8) * 8)
        for cand in range(tb, lo - 1, -8):
            if batch % cand == 0:
                return cand
    return tb


def _pad_batch(x, tb):
    """Zero-pad the batch axis up to a multiple of tb (fallback only; the
    tile chooser tries hard to avoid ever needing this copy)."""
    b = x.shape[0]
    bp = ((b + tb - 1) // tb) * tb
    if bp != b:
        pad = [(0, bp - b)] + [(0, 0)] * (x.ndim - 1)
        x = jnp.pad(x, pad)
    return x, bp


# ----------------------------- kernels ---------------------------------------

def _bi_interaction_kernel(x_ref, o_ref):
    # x_ref: (tb, F, D) -> o_ref: (tb, D)
    x = x_ref[...].astype(jnp.float32)
    s = jnp.sum(x, axis=1)                 # sum over fields
    sq = jnp.sum(x * x, axis=1)            # sum of squares over fields
    o_ref[...] = ((s * s - sq) * 0.5).astype(o_ref.dtype)


def _product_sum_pooling_kernel(x_ref, o_ref):
    # x_ref: (tb, F, D) -> o_ref: (tb, 1)
    x = x_ref[...].astype(jnp.float32)
    s = jnp.sum(x, axis=1)
    sq = jnp.sum(x * x, axis=1)
    bi = (s * s - sq) * 0.5
    o_ref[...] = jnp.sum(bi, axis=-1, keepdims=True).astype(o_ref.dtype)


def _make_inner_product_rows_kernel(num_fields):
    """Small-F pairwise dot products: (tb, F, D) -> (tb, P), P = F(F-1)/2.

    Grouped by leading field p: one broadcasted multiply against the
    trailing fields + one lane reduce, stored straight into the contiguous
    o_ref[:, off:off+w] slice as it is produced.  No per-pair (tb, 1)
    columns, no concatenate (no vreg spills / XLU scatter), no MXU and no
    (B, F, F) HBM round-trip.  Pair order matches torch triu row-major.
    """
    F = num_fields

    def kernel(x_ref, o_ref):
        off = 0
        for p in range(F - 1):              # static, unrolled
            w = F - 1 - p
            lead = x_ref[:, p:p + 1, :].astype(jnp.float32)   # (tb, 1, D)
            rest = x_ref[:, p + 1:, :].astype(jnp.float32)    # (tb, w, D)
            o_ref[:, off:off + w] = jnp.sum(lead * rest, axis=-1).astype(o_ref.dtype)
            off += w
    return kernel


def _make_inner_product_gram_kernel(num_fields):
    """Wide-F MXU path: the Gram matrix stays on-chip and only the packed
    (tb, P) upper triangle is written per grid step — no (B, F, F) HBM
    round-trip and no XLA gather afterwards."""
    F = num_fields

    def kernel(x_ref, o_ref):
        x = x_ref[...]
        gram = jnp.einsum("bfd,bgd->bfg", x, x,
                          preferred_element_type=jnp.float32)  # (tb, F, F)
        off = 0
        for r in range(F - 1):              # static, unrolled triu packing
            w = F - 1 - r
            o_ref[:, off:off + w] = gram[:, r, r + 1:].astype(o_ref.dtype)
            off += w
    return kernel


def _make_elementwise_product_kernel(num_fields):
    """(tb, F, D) -> (tb, P, D).  Grouped by leading field: each field slice
    is read once and multiplied against the (F-1-p) trailing fields in one
    shot, stored as one contiguous (tb, w, D) chunk — F-1 coalesced stores
    per tile instead of P per-pair sublane-strided stores."""
    F = num_fields

    def kernel(x_ref, o_ref):
        off = 0
        for p in range(F - 1):              # static, unrolled
            w = F - 1 - p
            lead = x_ref[:, p:p + 1, :]     # (tb, 1, D), read once
            rest = x_ref[:, p + 1:, :]      # (tb, w, D)
            o_ref[:, off:off + w, :] = (lead * rest).astype(o_ref.dtype)
            off += w
    return kernel


# ----------------------------- module wrapper ---------------------------------

class InnerProductLayer:
    """JAX/Pallas port of the PyTorch InnerProductLayer.

    outputs:
      product_sum_pooling    -> (bs, 1)
      Bi_interaction_pooling -> (bs, emb_dim)
      inner_product          -> (bs, F*(F-1)/2)
      elementwise_product    -> (bs, F*(F-1)/2, emb_dim)
    """

    _PAIRWISE_F_THRESHOLD = 16   # below this, skip the MXU entirely

    def __init__(self, num_fields=None, output="product_sum_pooling"):
        if output not in ["product_sum_pooling", "Bi_interaction_pooling",
                          "inner_product", "elementwise_product"]:
            raise ValueError(
                "InnerProductLayer output={} is not supported.".format(output))
        self._output_type = output
        if num_fields is None:
            if output in ["inner_product", "elementwise_product"]:
                raise ValueError(
                    "num_fields is required when InnerProductLayer output={}."
                    .format(output))
            self.num_fields = None
        else:
            self.num_fields = int(num_fields)
            self.interaction_units = int(num_fields * (num_fields - 1) / 2)

    # ---- shared driver: 1-D batch grid, one (tb, F, D) input block ----------
    def _run_batched(self, kernel, x, out_trailing, bytes_per_row):
        B, F, D = x.shape
        tb = _choose_tb(B, bytes_per_row)
        xp, Bp = _pad_batch(x, tb)          # no-op copy when tb divides B
        grid = (Bp // tb,)
        n_out = len(out_trailing)
        # TODO(synk): if exposed DMA shows up in xprof, add
        # pipeline_mode=pl.Buffered(3) on the input spec.
        out = pl.pallas_call(
            kernel,
            out_shape=jax.ShapeDtypeStruct((Bp,) + out_trailing, x.dtype),
            grid_spec=pltpu.PrefetchScalarGridSpec(
                num_scalar_prefetch=0,
                grid=grid,
                in_specs=[pl.BlockSpec((tb, F, D), lambda i: (i, 0, 0))],
                out_specs=pl.BlockSpec((tb,) + out_trailing,
                                       lambda i: (i,) + (0,) * n_out),
            ),
            compiler_params=_COMPILER_PARAMS,
        )(xp)
        if Bp != B:
            out = out[:B]
        return out

    def __call__(self, feature_emb):
        B, F, D = feature_emb.shape
        # TODO(synk): when emb_dim < 128, a lane-dense (B, F*D) layout for the
        # pooling modes would recover full lane/HBM-burst utilization.
        item = jnp.dtype(feature_emb.dtype).itemsize   # actual block dtypes

        if self._output_type == "Bi_interaction_pooling":
            return self._run_batched(_bi_interaction_kernel, feature_emb,
                                     (D,), (F * D + D) * item)

        if self._output_type == "product_sum_pooling":
            return self._run_batched(_product_sum_pooling_kernel, feature_emb,
                                     (1,), (F * D + 1) * item)

        P = F * (F - 1) // 2

        if self._output_type == "inner_product":
            if F <= self._PAIRWISE_F_THRESHOLD:
                kernel = _make_inner_product_rows_kernel(F)
            else:
                kernel = _make_inner_product_gram_kernel(F)
            return self._run_batched(kernel, feature_emb,
                                     (P,), (F * D + P) * item)

        # elementwise_product
        return self._run_batched(_make_elementwise_product_kernel(F),
                                 feature_emb,
                                 (P, D), (F * D + P * D) * item)


# ----------------------------- demo / check -----------------------------------

if __name__ == "__main__":
    key = jax.random.PRNGKey(0)
    B, F, D = 16, 8, 128  # batch, num_fields, emb_dim
    x = jax.random.normal(key, (B, F, D), dtype=jnp.float32)

    # Pure-JAX references.
    s = jnp.sum(x, axis=1)
    sq = jnp.sum(x * x, axis=1)
    bi_ref = (s * s - sq) * 0.5
    psp_ref = jnp.sum(bi_ref, axis=-1, keepdims=True)
    p_idx, q_idx = np.triu_indices(F, 1)
    ip_ref = jnp.einsum("bfd,bgd->bfg", x, x)[:, p_idx, q_idx]
    ew_ref = x[:, p_idx, :] * x[:, q_idx, :]

    # default mode: product_sum_pooling -> (bs, 1)
    out = jax.block_until_ready(InnerProductLayer()(x))
    np.testing.assert_allclose(np.asarray(out), np.asarray(psp_ref),
                               rtol=1e-4, atol=1e-4)

    # Bi_interaction_pooling -> (bs, emb_dim)
    bi = jax.block_until_ready(
        InnerProductLayer(output="Bi_interaction_pooling")(x))
    np.testing.assert_allclose(np.asarray(bi), np.asarray(bi_ref),
                               rtol=1e-4, atol=1e-4)

    # inner_product -> (bs, F*(F-1)/2)
    ip = jax.block_until_ready(
        InnerProductLayer(num_fields=F, output="inner_product")(x))
    np.testing.assert_allclose(np.asarray(ip), np.asarray(ip_ref),
                               rtol=1e-4, atol=1e-4)

    # elementwise_product -> (bs, F*(F-1)/2, emb_dim)
    ew = jax.block_until_ready(
        InnerProductLayer(num_fields=F, output="elementwise_product")(x))
    np.testing.assert_allclose(np.asarray(ew), np.asarray(ew_ref),
                               rtol=1e-5, atol=1e-5)

    # non-divisible batch (exercises the pad/slice fallback path)
    B2 = 10
    x2 = jax.random.normal(jax.random.PRNGKey(1), (B2, F, D), dtype=jnp.float32)
    s2 = jnp.sum(x2, axis=1)
    sq2 = jnp.sum(x2 * x2, axis=1)
    psp2_ref = jnp.sum((s2 * s2 - sq2) * 0.5, axis=-1, keepdims=True)
    out2 = jax.block_until_ready(InnerProductLayer()(x2))
    np.testing.assert_allclose(np.asarray(out2), np.asarray(psp2_ref),
                               rtol=1e-4, atol=1e-4)

    print("KERNEL_OK")
</pallas_src>

<mosaic_0001>
module attributes {stable_mosaic.version = 11 : i64} {
  func.func @_product_sum_pooling_kernel(%arg0: i32, %arg1: memref<16x8x128xf32, #tpu.memory_space<vmem>>, %arg2: memref<16x1xf32, #tpu.memory_space<vmem>>) attributes {dimension_semantics = [#tpu.dimension_semantics<parallel>], iteration_bounds = array<i64: 1>, scalar_prefetch = 0 : i64, scratch_operands = 0 : i64, tpu.core_type = #tpu.core_type<tc>, window_params = [{transform_indices = @transform_0, window_bounds = array<i64: 16, 8, 128>}, {transform_indices = @transform_1, window_bounds = array<i64: 16, 1>}]} {
    %c0 = arith.constant 0 : index
    %c0_0 = arith.constant 0 : index
    %c0_1 = arith.constant 0 : index
    %0 = vector.load %arg1[%c0, %c0_0, %c0_1] : memref<16x8x128xf32, #tpu.memory_space<vmem>>, vector<16x8x128xf32>
    %cst = arith.constant dense<0.000000e+00> : vector<16x128xf32>
    %1 = vector.multi_reduction <add>, %0, %cst [1] : vector<16x8x128xf32> to vector<16x128xf32>
    %2 = arith.mulf %0, %0 : vector<16x8x128xf32>
    %cst_2 = arith.constant dense<0.000000e+00> : vector<16x128xf32>
    %3 = vector.multi_reduction <add>, %2, %cst_2 [1] : vector<16x8x128xf32> to vector<16x128xf32>
    %4 = arith.mulf %1, %1 : vector<16x128xf32>
    %5 = arith.subf %4, %3 : vector<16x128xf32>
    %cst_3 = arith.constant 5.000000e-01 : f32
    %6 = vector.broadcast %cst_3 : f32 to vector<16x128xf32>
    %7 = arith.mulf %5, %6 : vector<16x128xf32>
    %cst_4 = arith.constant dense<0.000000e+00> : vector<16xf32>
    %8 = vector.multi_reduction <add>, %7, %cst_4 [1] : vector<16x128xf32> to vector<16xf32>
    %9 = vector.shape_cast %8 : vector<16xf32> to vector<16x1xf32>
    %c0_5 = arith.constant 0 : index
    %c0_6 = arith.constant 0 : index
    %10 = vector.load %arg2[%c0_5, %c0_6] : memref<16x1xf32, #tpu.memory_space<vmem>>, vector<16x1xf32>
    tpu.vector_store %arg2[%c0_5, %c0_6], %9 {strides = array<i32>} : memref<16x1xf32, #tpu.memory_space<vmem>>, vector<16x1xf32>,
    return
  }
  func.func @transform_0(%arg0: i32) -> (i32, i32, i32) {
    %c0_i32 = arith.constant 0 : i32
    %c0_i32_0 = arith.constant 0 : i32
    %c0_i32_1 = arith.constant 0 : i32
    return %arg0, %c0_i32, %c0_i32_0 : i32, i32, i32
  }
  func.func @transform_1(%arg0: i32) -> (i32, i32) {
    %c0_i32 = arith.constant 0 : i32
    %c0_i32_0 = arith.constant 0 : i32
    return %arg0, %c0_i32 : i32, i32
  }
}

</mosaic_0001>

<bundles_post_ra>
// kernel: tpu_custom_call.1
= control target key start
LH: loop header
LB: loop body
LE: loop exit
PB: predicated region body
PF: predicated region fallthrough
CT: control target
= control target key end

     0   :  { %6 = vsyncpa [#allocation3], 0  ;;  %s370_s6 = smov [#allocation2]   ;;  %s502_s0 = inlined_call_operand.hbm [shape: f32[16,8,128], index: 0, kind: input, shape index: {}]   ;;  %s503_s1 = inlined_call_operand.vmem [shape: f32[16,1], index: 1, kind: output, shape index: {}]  }
   0x1   :  { %s12_s7 = sshll.u32 %s370_s6, 4  ;;  %s13_s7 = int_to_ptr.vmem [resolvable:$true] %s12_s7 }
   0x2   :  { %s356_s8 = scalar_lea.vmem %s13_s7, 2048  ;;  %p361_p1 = scmp.lt.s32.totalorder %s13_s7, %s13_s7 }
   0x3   :  { %p357_p0 = scmp.ne.s32.totalorder %s13_s7, %s356_s8  ;;  %p362_p2 = scmp.lt.s32.totalorder %s356_s8, %s356_s8 }
   0x5   :  { %p363_p3 = por %p362_p2, %p361_p1 }
   0x7   :  { %p364_p4 = pnand %p363_p3, %p357_p0 }
   0x9   :  { %367 = shalt.err (!%p364_p4)
}
   0xa   :  { %s371_s9 = smov 128   ;;  %s372_s10 = smov 8  }
   0xb   :  { %18 = dma.hbm_to_vmem [thread:$0]  %s502_s0, 2048, %s13_s7, [#allocation3], %s371_s9, %s371_s9, %s372_s10  }
   0xc   :  { %368 = dma.done.wait [#allocation3], 2048  }
   0xd   :  { %369 = vsyncadd [#allocation3], 4294965248  ;;  %v22_v0 = vld [vmem:[#allocation2] sm:$0xff]  ;;  %v23_v1 = vld [vmem:[#allocation2 + $0x8] sm:$0xff]  ;;  %vm310_vm0 = vcmask 1041409   ;;  %vm312_vm1 = vcmask 1042434  }
   0xe   :  { %v24_v2 = vld [vmem:[#allocation2 + $0x10] sm:$0xff]  ;;  %v25_v3 = vld [vmem:[#allocation2 + $0x18] sm:$0xff]  ;;  %v26_v4 = vld [vmem:[#allocation2 + $0x20] sm:$0xff]  ;;  %v38_v6 = vrot.slane %v22_v0, 4  ;;  %v44_v7 = vrot.slane %v23_v1, 4  ;;  %v386_v9 = vmul.f32 %v22_v0, %v22_v0  ;;  %v135_v15 = vmul.f32 %v23_v1, %v23_v1 }
   0xf   :  { %v27_v5 = vld [vmem:[#allocation2 + $0x28] sm:$0xff]  ;;  %v50_v8 = vrot.slane %v24_v2, 4  ;;  %v28_v10 = vld [vmem:[#allocation2 + $0x30] sm:$0xff]  ;;  %v29_v11 = vld [vmem:[#allocation2 + $0x38] sm:$0xff]  ;;  %v56_v12 = vrot.slane %v25_v3, 4  ;;  %v62_v13 = vrot.slane %v26_v4, 4  ;;  %v136_v57 = vmul.f32 %v24_v2, %v24_v2 }
  0x10   :  { %v68_v14 = vrot.slane %v27_v5, 4  ;;  %v39_v16 = vadd.f32 %v38_v6, %v22_v0  ;;  %v45_v17 = vadd.f32 %v44_v7, %v23_v1  ;;  %v74_v19 = vrot.slane %v28_v10, 4 }
  0x11   :  { %v51_v18 = vadd.f32 %v50_v8, %v24_v2  ;;  %v57_v20 = vadd.f32 %v56_v12, %v25_v3  ;;  %v63_v21 = vadd.f32 %v62_v13, %v26_v4  ;;  %v80_v23 = vrot.slane %v29_v11, 4 }
  0x12   :  { %v69_v22 = vadd.f32 %v68_v14, %v27_v5  ;;  %v40_v24 = vrot.slane %v39_v16, 2  ;;  %v46_v25 = vrot.slane %v45_v17, 2  ;;  %v75_v27 = vadd.f32 %v74_v19, %v28_v10 }
  0x13   :  { %v52_v26 = vrot.slane %v51_v18, 2  ;;  %v58_v28 = vrot.slane %v57_v20, 2  ;;  %v64_v29 = vrot.slane %v63_v21, 2  ;;  %v81_v31 = vadd.f32 %v80_v23, %v29_v11 }
  0x14   :  { %v70_v30 = vrot.slane %v69_v22, 2  ;;  %v41_v32 = vadd.f32 %v40_v24, %v39_v16  ;;  %v47_v33 = vadd.f32 %v46_v25, %v45_v17  ;;  %v76_v35 = vrot.slane %v75_v27, 2 }
  0x15   :  { %v53_v34 = vadd.f32 %v52_v26, %v51_v18  ;;  %v59_v36 = vadd.f32 %v58_v28, %v57_v20  ;;  %v65_v37 = vadd.f32 %v64_v29, %v63_v21  ;;  %v82_v39 = vrot.slane %v81_v31, 2 }
  0x16   :  { %v71_v38 = vadd.f32 %v70_v30, %v69_v22  ;;  %v42_v40 = vrot.slane %v41_v32, 1  ;;  %v48_v41 = vrot.slane %v47_v33, 1  ;;  %v77_v43 = vadd.f32 %v76_v35, %v75_v27 }
  0x17   :  { %v54_v42 = vrot.slane %v53_v34, 1  ;;  %v60_v44 = vrot.slane %v59_v36, 1  ;;  %v66_v45 = vrot.slane %v65_v37, 1  ;;  %v83_v47 = vadd.f32 %v82_v39, %v81_v31 }
  0x18   :  { %v72_v46 = vrot.slane %v71_v38, 1  ;;  %v388_v48 = vadd.f32 %v42_v40, %v41_v32  ;;  %v390_v49 = vadd.f32 %v48_v41, %v47_v33  ;;  %v78_v51 = vrot.slane %v77_v43, 1 }
  0x19   :  { %v392_v50 = vadd.f32 %v54_v42, %v53_v34  ;;  %v394_v52 = vadd.f32 %v60_v44, %v59_v36  ;;  %v396_v53 = vadd.f32 %v66_v45, %v65_v37  ;;  %v84_v55 = vrot.slane %v83_v47, 1 }
  0x1a   :  { %v398_v54 = vadd.f32 %v72_v46, %v71_v38  ;;  %v400_v56 = vadd.f32 %v78_v51, %v77_v43  ;;  %v137_v58 = vmul.f32 %v25_v3, %v25_v3  ;;  %v138_v59 = vmul.f32 %v26_v4, %v26_v4 }
  0x1b   :  { %v402_v60 = vadd.f32 %v84_v55, %v83_v47  ;;  %v139_v61 = vmul.f32 %v27_v5, %v27_v5  ;;  %v140_v62 = vmul.f32 %v28_v10, %v28_v10  ;;  %v141_v63 = vmul.f32 %v29_v11, %v29_v11 }
  0x1c   :  { %v150_v0 = vrot.slane %v386_v9, 4  ;;  %v156_v1 = vrot.slane %v135_v15, 4  ;;  %v162_v6 = vrot.slane %v136_v57, 4  ;;  %v168_v7 = vrot.slane %v137_v58, 4 }
  0x1d   :  { %v174_v8 = vrot.slane %v138_v59, 4  ;;  %v180_v12 = vrot.slane %v139_v61, 4  ;;  %v186_v13 = vrot.slane %v140_v62, 4  ;;  %v192_v14 = vrot.slane %v141_v63, 4 }
  0x1e   :  { %v151_v16 = vadd.f32 %v150_v0, %v386_v9  ;;  %v157_v17 = vadd.f32 %v156_v1, %v135_v15  ;;  %v163_v2 = vadd.f32 %v162_v6, %v136_v57  ;;  %v169_v3 = vadd.f32 %v168_v7, %v137_v58  ;;  %v422_v1 = vld [vmem:[#allocation2 + $0x40] sm:$0xff] }
  0x1f   :  { %v175_v4 = vadd.f32 %v174_v8, %v138_v59  ;;  %v181_v18 = vadd.f32 %v180_v12, %v139_v61  ;;  %v187_v19 = vadd.f32 %v186_v13, %v140_v62  ;;  %v193_v5 = vadd.f32 %v192_v14, %v141_v63  ;;  %v424_v8 = vld [vmem:[#allocation2 + $0x48] sm:$0xff]  ;;  %v428_v12 = vld [vmem:[#allocation2 + $0x58] sm:$0xff] }
  0x20   :  { %v152_v10 = vrot.slane %v151_v16, 2  ;;  %v158_v11 = vrot.slane %v157_v17, 2  ;;  %v164_v20 = vrot.slane %v163_v2, 2  ;;  %v170_v21 = vrot.slane %v169_v3, 2 }
  0x21   :  { %v176_v22 = vrot.slane %v175_v4, 2  ;;  %v182_v23 = vrot.slane %v181_v18, 2  ;;  %v188_v24 = vrot.slane %v187_v19, 2  ;;  %v194_v25 = vrot.slane %v193_v5, 2 }
  0x22   :  { %v153_v26 = vadd.f32 %v152_v10, %v151_v16  ;;  %v159_v27 = vadd.f32 %v158_v11, %v157_v17  ;;  %v165_v28 = vadd.f32 %v164_v20, %v163_v2  ;;  %v171_v29 = vadd.f32 %v170_v21, %v169_v3  ;;  %v430_v16 = vld [vmem:[#allocation2 + $0x60] sm:$0xff]  ;;  %v432_v17 = vld [vmem:[#allocation2 + $0x68] sm:$0xff] }
  0x23   :  { %v177_v9 = vadd.f32 %v176_v22, %v175_v4  ;;  %v183_v15 = vadd.f32 %v182_v23, %v181_v18  ;;  %v189_v30 = vadd.f32 %v188_v24, %v187_v19  ;;  %v195_v31 = vadd.f32 %v194_v25, %v193_v5 }
  0x24   :  { %v154_v32 = vrot.slane %v153_v26, 1  ;;  %v160_v33 = vrot.slane %v159_v27, 1  ;;  %v166_v34 = vrot.slane %v165_v28, 1  ;;  %v172_v35 = vrot.slane %v171_v29, 1 }
  0x25   :  { %v178_v36 = vrot.slane %v177_v9, 1  ;;  %v184_v37 = vrot.slane %v183_v15, 1  ;;  %v190_v38 = vrot.slane %v189_v30, 1  ;;  %v196_v39 = vrot.slane %v195_v31, 1 }
  0x26   :  { %vm314_vm2 = vcmask 1043459   ;;  %v155_v40 = vadd.f32 %v154_v32, %v153_v26  ;;  %v161_v41 = vadd.f32 %v160_v33, %v159_v27  ;;  %v167_v42 = vadd.f32 %v166_v34, %v165_v28 }
  0x27   :  { %v173_v43 = vadd.f32 %v172_v35, %v171_v29  ;;  %vm316_vm3 = vcmask 1044484   ;;  %v179_v44 = vadd.f32 %v178_v36, %v177_v9  ;;  %v185_v45 = vadd.f32 %v184_v37, %v183_v15  ;;  %v37_v36 = vld [vmem:[#allocation2 + $0x78] sm:$0xff] }
  0x28   :  { %v191_v46 = vadd.f32 %v190_v38, %v189_v30  ;;  %v197_v47 = vadd.f32 %v196_v39, %v195_v31  ;;  %vm318_vm4 = vcmask 1045509   ;;  %v246_v51 = vmul.f32 %v388_v48, %v388_v48  ;;  %v36_v31 = vld [vmem:[#allocation2 + $0x70] sm:$0xff] }
  0x29   :  { %v247_v55 = vmul.f32 %v390_v49, %v390_v49  ;;  %v248_v57 = vmul.f32 %v392_v50, %v392_v50  ;;  %v249_v58 = vmul.f32 %v394_v52, %v394_v52  ;;  %vm320_vm5 = vcmask 1046534  }
  0x2a   :  { %v250_v59 = vmul.f32 %v396_v53, %v396_v53  ;;  %v251_v61 = vmul.f32 %v398_v54, %v398_v54  ;;  %v252_v62 = vmul.f32 %v400_v56, %v400_v56  ;;  %v253_v48 = vmul.f32 %v402_v60, %v402_v60  ;;  %v426_v54 = vld [vmem:[#allocation2 + $0x50] sm:$0xff] }
  0x2b   :  { %vm322_vm6 = vcmask 1047559   ;;  %v262_v49 = vsub.f32 %v246_v51, %v155_v40  ;;  %v263_v63 = vsub.f32 %v247_v55, %v161_v41  ;;  %v264_v50 = vsub.f32 %v248_v57, %v167_v42 }
  0x2c   :  { %v265_v0 = vsub.f32 %v249_v58, %v173_v43  ;;  %v266_v52 = vsub.f32 %v250_v59, %v179_v44  ;;  %v267_v6 = vsub.f32 %v251_v61, %v185_v45  ;;  %v268_v7 = vsub.f32 %v252_v62, %v191_v46 }
  0x2d   :  { %v269_v53 = vsub.f32 %v253_v48, %v197_v47  ;;  %v278_v56 = vmul.f32 0.5, %v262_v49  ;;  %v279_v13 = vmul.f32 0.5, %v263_v63  ;;  %v280_v60 = vmul.f32 0.5, %v264_v50 }
  0x2e   :  { %v281_v14 = vmul.f32 0.5, %v265_v0  ;;  %v282_v2 = vmul.f32 0.5, %v266_v52  ;;  %v283_v3 = vmul.f32 0.5, %v267_v6  ;;  %v284_v4 = vmul.f32 0.5, %v268_v7 }
  0x2f   :  { %v285_v18 = vmul.f32 0.5, %v269_v53  ;;  %v311_v19 = vsel %vm310_vm0, %v279_v13, %v278_v56  ;;  %v86_v5 = vrot.slane %v422_v1, 4  ;;  %v92_v10 = vrot.slane %v424_v8, 4 }
  0x30   :  { %v98_v11 = vrot.slane %v426_v54, 4  ;;  %v313_v20 = vsel %vm312_vm1, %v280_v60, %v311_v19  ;;  %v104_v21 = vrot.slane %v428_v12, 4  ;;  %v110_v22 = vrot.slane %v430_v16, 4 }
  0x31   :  { %v116_v23 = vrot.slane %v432_v17, 4  ;;  %v315_v24 = vsel %vm314_vm2, %v281_v14, %v313_v20  ;;  %v87_v25 = vadd.f32 %v86_v5, %v422_v1  ;;  %v93_v26 = vadd.f32 %v92_v10, %v424_v8 }
  0x32   :  { %v99_v27 = vadd.f32 %v98_v11, %v426_v54  ;;  %v317_v28 = vsel %vm316_vm3, %v282_v2, %v315_v24  ;;  %v105_v29 = vadd.f32 %v104_v21, %v428_v12  ;;  %v111_v9 = vadd.f32 %v110_v22, %v430_v16 }
  0x33   :  { %v117_v15 = vadd.f32 %v116_v23, %v432_v17  ;;  %v319_v30 = vsel %vm318_vm4, %v283_v3, %v317_v28  ;;  %v88_v32 = vrot.slane %v87_v25, 2  ;;  %v94_v33 = vrot.slane %v93_v26, 2 }
  0x34   :  { %v100_v34 = vrot.slane %v99_v27, 2  ;;  %v321_v35 = vsel %vm320_vm5, %v284_v4, %v319_v30  ;;  %v106_v37 = vrot.slane %v105_v29, 2  ;;  %v112_v38 = vrot.slane %v111_v9, 2 }
  0x35   :  { %v118_v39 = vrot.slane %v117_v15, 2  ;;  %v323_v40 = vsel %vm322_vm6, %v285_v18, %v321_v35  ;;  %v89_v41 = vadd.f32 %v88_v32, %v87_v25  ;;  %v95_v42 = vadd.f32 %v94_v33, %v93_v26 }
  0x36   :  { %v101_v43 = vadd.f32 %v100_v34, %v99_v27  ;;  %333 = vadd.xlane.f32.xlu0 %v323_v40  ;;  %v107_v44 = vadd.f32 %v106_v37, %v105_v29  ;;  %v113_v45 = vadd.f32 %v112_v38, %v111_v9  ;;  %v122_v47 = vrot.slane %v36_v31, 4 }
  0x37   :  { %v119_v46 = vadd.f32 %v118_v39, %v117_v15  ;;  %v90_v51 = vrot.slane %v89_v41, 1  ;;  %v96_v55 = vrot.slane %v95_v42, 1  ;;  %v128_v58 = vrot.slane %v37_v36, 4 }
  0x38   :  { %v102_v57 = vrot.slane %v101_v43, 1  ;;  %v108_v59 = vrot.slane %v107_v44, 1  ;;  %v114_v61 = vrot.slane %v113_v45, 1  ;;  %v123_v48 = vadd.f32 %v122_v47, %v36_v31 }
  0x39   :  { %v120_v62 = vrot.slane %v119_v46, 1  ;;  %v453_v49 = vadd.f32 %v90_v51, %v89_v41  ;;  %v455_v63 = vadd.f32 %v96_v55, %v95_v42  ;;  %v129_v0 = vadd.f32 %v128_v58, %v37_v36 }
  0x3a   :  { %v457_v50 = vadd.f32 %v102_v57, %v101_v43  ;;  %v459_v52 = vadd.f32 %v108_v59, %v107_v44  ;;  %v461_v6 = vadd.f32 %v114_v61, %v113_v45  ;;  %v124_v53 = vrot.slane %v123_v48, 2 }
  0x3b   :  { %v463_v7 = vadd.f32 %v120_v62, %v119_v46  ;;  %v130_v56 = vrot.slane %v129_v0, 2  ;;  %v142_v13 = vmul.f32 %v422_v1, %v422_v1  ;;  %v143_v60 = vmul.f32 %v424_v8, %v424_v8 }
  0x3c   :  { %v144_v14 = vmul.f32 %v426_v54, %v426_v54  ;;  %v125_v2 = vadd.f32 %v124_v53, %v123_v48  ;;  %v145_v3 = vmul.f32 %v428_v12, %v428_v12  ;;  %v146_v4 = vmul.f32 %v430_v16, %v430_v16 }
  0x3d   :  { %v147_v18 = vmul.f32 %v432_v17, %v432_v17  ;;  %v131_v19 = vadd.f32 %v130_v56, %v129_v0  ;;  %v148_v5 = vmul.f32 %v36_v31, %v36_v31  ;;  %v149_v10 = vmul.f32 %v37_v36, %v37_v36 }
  0x3e   :  { %v198_v1 = vrot.slane %v142_v13, 4  ;;  %v126_v11 = vrot.slane %v125_v2, 1  ;;  %v204_v20 = vrot.slane %v143_v60, 4  ;;  %v210_v8 = vrot.slane %v144_v14, 4 }
  0x3f   :  { %v216_v21 = vrot.slane %v145_v3, 4  ;;  %v132_v22 = vrot.slane %v131_v19, 1  ;;  %v222_v23 = vrot.slane %v146_v4, 4  ;;  %v228_v24 = vrot.slane %v147_v18, 4 }
  0x40   :  { %v199_v54 = vadd.f32 %v198_v1, %v142_v13  ;;  %v127_v25 = vadd.f32 %v126_v11, %v125_v2  ;;  %v205_v12 = vadd.f32 %v204_v20, %v143_v60  ;;  %v211_v26 = vadd.f32 %v210_v8, %v144_v14 }
  0x41   :  { %v217_v27 = vadd.f32 %v216_v21, %v145_v3  ;;  %v133_v16 = vadd.f32 %v132_v22, %v131_v19  ;;  %v223_v29 = vadd.f32 %v222_v23, %v146_v4  ;;  %v229_v17 = vadd.f32 %v228_v24, %v147_v18 }
  0x42   :  { %v200_v28 = vrot.slane %v199_v54, 2  ;;  %v206_v9 = vrot.slane %v205_v12, 2  ;;  %v212_v15 = vrot.slane %v211_v26, 2  ;;  %v234_v31 = vrot.slane %v148_v5, 4 }
  0x43   :  { %v218_v30 = vrot.slane %v217_v27, 2  ;;  %v224_v33 = vrot.slane %v223_v29, 2  ;;  %v230_v34 = vrot.slane %v229_v17, 2  ;;  %v240_v35 = vrot.slane %v149_v10, 4 }
  0x44   :  { %v201_v32 = vadd.f32 %v200_v28, %v199_v54  ;;  %v207_v36 = vadd.f32 %v206_v9, %v205_v12  ;;  %v213_v37 = vadd.f32 %v212_v15, %v211_v26  ;;  %v235_v39 = vadd.f32 %v234_v31, %v148_v5 }
  0x45   :  { %v219_v38 = vadd.f32 %v218_v30, %v217_v27  ;;  %v225_v41 = vadd.f32 %v224_v33, %v223_v29  ;;  %v231_v42 = vadd.f32 %v230_v34, %v229_v17  ;;  %v241_v43 = vadd.f32 %v240_v35, %v149_v10 }
  0x46   :  { %v202_v40 = vrot.slane %v201_v32, 1  ;;  %v208_v44 = vrot.slane %v207_v36, 1  ;;  %v214_v45 = vrot.slane %v213_v37, 1  ;;  %v236_v47 = vrot.slane %v235_v39, 2 }
  0x47   :  { %v220_v46 = vrot.slane %v219_v38, 1  ;;  %v226_v55 = vrot.slane %v225_v41, 1  ;;  %v232_v57 = vrot.slane %v231_v42, 1  ;;  %v242_v58 = vrot.slane %v241_v43, 2 }
  0x48   :  { %v203_v51 = vadd.f32 %v202_v40, %v201_v32  ;;  %v209_v59 = vadd.f32 %v208_v44, %v207_v36  ;;  %v215_v61 = vadd.f32 %v214_v45, %v213_v37  ;;  %v237_v48 = vadd.f32 %v236_v47, %v235_v39 }
  0x49   :  { %v221_v62 = vadd.f32 %v220_v46, %v219_v38  ;;  %v227_v0 = vadd.f32 %v226_v55, %v225_v41  ;;  %v233_v53 = vadd.f32 %v232_v57, %v231_v42  ;;  %v243_v56 = vadd.f32 %v242_v58, %v241_v43 }
  0x4a   :  { %v254_v13 = vmul.f32 %v453_v49, %v453_v49  ;;  %v238_v60 = vrot.slane %v237_v48, 1  ;;  %v255_v14 = vmul.f32 %v455_v63, %v455_v63  ;;  %v256_v2 = vmul.f32 %v457_v50, %v457_v50 }
  0x4b   :  { %v257_v3 = vmul.f32 %v459_v52, %v459_v52  ;;  %v244_v4 = vrot.slane %v243_v56, 1  ;;  %v258_v18 = vmul.f32 %v461_v6, %v461_v6  ;;  %v259_v19 = vmul.f32 %v463_v7, %v463_v7 }
  0x4c   :  { %v260_v5 = vmul.f32 %v127_v25, %v127_v25  ;;  %v239_v10 = vadd.f32 %v238_v60, %v237_v48  ;;  %v261_v49 = vmul.f32 %v133_v16, %v133_v16  ;;  %v270_v1 = vsub.f32 %v254_v13, %v203_v51 }
  0x4d   :  { %v271_v11 = vsub.f32 %v255_v14, %v209_v59  ;;  %v245_v20 = vadd.f32 %v244_v4, %v243_v56  ;;  %v272_v63 = vsub.f32 %v256_v2, %v215_v61  ;;  %v273_v8 = vsub.f32 %v257_v3, %v221_v62 }
  0x4e   :  { %v274_v21 = vsub.f32 %v258_v18, %v227_v0  ;;  %v275_v50 = vsub.f32 %v259_v19, %v233_v53  ;;  %v276_v22 = vsub.f32 %v260_v5, %v239_v10  ;;  %v286_v54 = vmul.f32 0.5, %v270_v1 }
  0x4f   :  { %v287_v52 = vmul.f32 0.5, %v271_v11  ;;  %v277_v23 = vsub.f32 %v261_v49, %v245_v20  ;;  %v288_v24 = vmul.f32 0.5, %v272_v63  ;;  %v289_v12 = vmul.f32 0.5, %v273_v8 }
  0x50   :  { %v290_v6 = vmul.f32 0.5, %v274_v21  ;;  %v291_v26 = vmul.f32 0.5, %v275_v50  ;;  %v292_v25 = vmul.f32 0.5, %v276_v22  ;;  %vm337_vm7 = vcmask 7168  }
  0x51   :  { %v324_v7 = vsel %vm310_vm0, %v287_v52, %v286_v54  ;;  %v293_v16 = vmul.f32 0.5, %v277_v23 }
  0x52   :  { %v325_v27 = vsel %vm312_vm1, %v288_v24, %v324_v7 }
  0x53   :  { %v326_v28 = vsel %vm314_vm2, %v289_v12, %v325_v27 }
  0x54   :  { %v327_v29 = vsel %vm316_vm3, %v290_v6, %v326_v28 }
  0x55   :  { %v328_v17 = vsel %vm318_vm4, %v291_v26, %v327_v29 }
  0x56   :  { %v329_v9 = vsel %vm320_vm5, %v292_v25, %v328_v17 }
  0x57   :  { %v330_v15 = vsel %vm322_vm6, %v293_v16, %v329_v9 }
  0x58   :  { %335 = vadd.xlane.f32.xlu0 %v330_v15 }
  0xbf   :  { %v334_v30 = vpop.xlane.xlu0 %333 }
  0xc0   :  { %338 = vst.msk [vmem:[%s503_s1] sm:$0xff] %vm337_vm7, %v334_v30 }
  0xe1   :  { %v336_v31 = vpop.xlane.xlu0 %335 }
  0xe2   :  { %339 = vst.msk [vmem:[%s503_s1 + $0x8] sm:$0xff] %vm337_vm7, %v336_v31 }
  0xe3   :  { %344 = vsyncpa [#allocation3], 1 }

</bundles_post_ra>
